<compile_context>
chip_gen: v7x
topology: tpu7x:2x2x1
jax: 0.10.0
libtpu: 0.0.40
codegen_flags: <defaults>
</compile_context>

<pallas_src>
import functools
import math

import jax
import jax.numpy as jnp
from jax.experimental import pallas as pl
from jax.experimental.pallas import tpu as pltpu

_LANES = 128              # lane width of a vreg
_TILE_ROWS = 2048         # rows of 128 lanes per tile (1 MiB f32 per buffer)
_MIN_PALLAS_ELEMS = 65536  # below this, plain jnp beats the pallas_call launch


def _round_up(x: int, m: int) -> int:
    return -(-x // m) * m


def _ndecoder_scale_kernel(wb_ref, t_ref, scale_ref):
    # wb_ref:    (1, 2) [w, b] f32 in SMEM
    # t_ref:     (block_rows, 128) treatment tile in VMEM, native dtype
    # scale_ref: (block_rows, 128) output tile in VMEM, native dtype
    w = wb_ref[0, 0]
    b = wb_ref[0, 1]
    t = t_ref[...].astype(jnp.float32)               # in-register cast (free under DMA)
    scale_ref[...] = jnp.exp(t * w + b).astype(scale_ref.dtype)  # exp -> EUP


@functools.partial(jax.jit, static_argnames=("tile_rows",))
def _scale_pallas(treatment, wb, *, tile_rows=_TILE_ROWS):
    """exp(treatment * w + b) via Pallas, lane-dense (rows, 128) tiling."""
    n, d = treatment.shape
    dtype = treatment.dtype

    rows = pl.cdiv(n, _LANES)
    # >= 2 grid steps when possible (pipelining + v7x 2-TC sharding), blocks
    # a multiple of 8 sublanes.
    block_rows = min(tile_rows, max(8, _round_up(pl.cdiv(rows, 2), 8)))
    rows_padded = _round_up(rows, block_rows)
    n_padded = rows_padded * _LANES

    flat = treatment.reshape(-1)
    if n_padded > n:
        # zero pad -> padded lanes produce exp(b), sliced off below; under jit
        # with allow_input_fusion this fuses into the pallas input DMA.
        flat = jnp.pad(flat, (0, n_padded - n))
    t2d = flat.reshape(rows_padded, _LANES)

    grid = (rows_padded // block_rows,)
    itemsize = jnp.dtype(dtype).itemsize
    cost = pl.CostEstimate(
        flops=2 * n_padded,
        transcendentals=n_padded,
        bytes_accessed=2 * n_padded * itemsize + 8,
    )

    scale2d = pl.pallas_call(
        _ndecoder_scale_kernel,
        out_shape=jax.ShapeDtypeStruct((rows_padded, _LANES), dtype),
        grid=grid,
        in_specs=[
            pl.BlockSpec((1, 2), lambda i: (0, 0), memory_space=pltpu.SMEM),
            pl.BlockSpec((block_rows, _LANES), lambda i: (i, 0)),
        ],
        out_specs=pl.BlockSpec((block_rows, _LANES), lambda i: (i, 0)),
        compiler_params=pltpu.CompilerParams(
            dimension_semantics=("parallel",),     # shard batch tiles on v7x 2 TCs
            allow_input_fusion=[False, True],      # let pad/reshape fuse into input
        ),
        cost_estimate=cost,
    )(wb, t2d)

    # undo padding / lane-dense view (fuses with consumers under jit)
    return scale2d.reshape(-1)[:n].reshape(n, d)


def ndecoder_forward(treatment, w_logsigma, b_logsigma, *,
                     tile_rows=_TILE_ROWS, min_pallas_elems=_MIN_PALLAS_ELEMS):
    """Returns (loc, scale) of the Normal distribution produced by NDecoder.

    treatment:   (N, 1) float
    w_logsigma:  (1, 1) float  -- logsigma_linear.weight
    b_logsigma:  (1,)   float  -- logsigma_linear.bias

    NOTE: callers should jax.jit the surrounding computation; the Pallas path
    is already jitted internally.
    """
    assert jnp.issubdtype(treatment.dtype, jnp.floating), "treatment must be floating"
    n, d = treatment.shape
    assert d == 1

    mu = treatment  # identity: no kernel copy, no extra HBM traffic

    if math.prod(treatment.shape) < min_pallas_elems:
        # Small-N fast path: a fused XLA elementwise op beats the kernel launch.
        w = w_logsigma.reshape(()).astype(jnp.float32)
        b = b_logsigma.reshape(()).astype(jnp.float32)
        scale = jnp.exp(treatment.astype(jnp.float32) * w + b).astype(treatment.dtype)
        return mu, scale

    # Pack Linear(1,1) params into one small SMEM array: [[w, b]] (f32 math).
    wb = jnp.concatenate(
        [w_logsigma.reshape(1), b_logsigma.reshape(1)]
    ).reshape(1, 2).astype(jnp.float32)

    scale = _scale_pallas(treatment, wb, tile_rows=tile_rows)
    return mu, scale


if __name__ == "__main__":
    key = jax.random.PRNGKey(0)
    k_t, k_w, k_b, k_t2, k_t3, k_fw, k_fb = jax.random.split(key, 7)

    # logsigma_linear: nn.Linear(1, 1)
    w_logsigma = jax.random.normal(k_w, (1, 1), dtype=jnp.float32) * 0.1
    b_logsigma = jax.random.normal(k_b, (1,), dtype=jnp.float32) * 0.1

    # feature_net: nn.Linear(1, 1) -- initialized for fidelity, unused in forward.
    _feature_w = jax.random.normal(k_fw, (1, 1), dtype=jnp.float32) * 0.1
    _feature_b = jax.random.normal(k_fb, (1,), dtype=jnp.float32) * 0.1

    def reference(t):
        t32 = t.astype(jnp.float32)
        ref_scale = jnp.exp(t32 @ w_logsigma.T + b_logsigma).astype(t.dtype)
        return t, ref_scale

    # --- Case A: tiny N (fast path), f32 ---
    t_a = jax.random.normal(k_t, (8, 1), dtype=jnp.float32)
    mu_a, sc_a = ndecoder_forward(t_a, w_logsigma, b_logsigma)
    jax.block_until_ready((mu_a, sc_a))
    ref_mu_a, ref_sc_a = reference(t_a)
    assert mu_a.shape == (8, 1) and sc_a.shape == (8, 1)
    assert jnp.allclose(mu_a, ref_mu_a, atol=1e-6)
    assert jnp.allclose(sc_a, ref_sc_a, atol=1e-5, rtol=1e-5)

    # --- Case B: Pallas kernel path, f32, needs tail padding, 2 grid steps ---
    t_b = jax.random.normal(k_t2, (3000, 1), dtype=jnp.float32)
    mu_b, sc_b = ndecoder_forward(t_b, w_logsigma, b_logsigma, min_pallas_elems=0)
    jax.block_until_ready((mu_b, sc_b))
    ref_mu_b, ref_sc_b = reference(t_b)
    assert mu_b.shape == (3000, 1) and sc_b.shape == (3000, 1)
    assert jnp.allclose(mu_b, ref_mu_b, atol=1e-6)
    assert jnp.allclose(sc_b, ref_sc_b, atol=1e-5, rtol=1e-5)

    # --- Case C: Pallas kernel path, bf16 native I/O, no padding needed ---
    t_c = jax.random.normal(k_t3, (2048, 1), dtype=jnp.float32).astype(jnp.bfloat16)
    mu_c, sc_c = ndecoder_forward(t_c, w_logsigma, b_logsigma, min_pallas_elems=0)
    jax.block_until_ready((mu_c, sc_c))
    ref_mu_c, ref_sc_c = reference(t_c)
    assert mu_c.dtype == jnp.bfloat16 and sc_c.dtype == jnp.bfloat16
    assert jnp.allclose(mu_c.astype(jnp.float32), ref_mu_c.astype(jnp.float32), atol=1e-6)
    assert jnp.allclose(sc_c.astype(jnp.float32), ref_sc_c.astype(jnp.float32),
                        atol=1e-2, rtol=1e-2)

    print("KERNEL_OK")
</pallas_src>

<mosaic_0001>
module attributes {stable_mosaic.version = 11 : i64} {
  func.func @_ndecoder_scale_kernel(%arg0: i32, %arg1: memref<1x2xf32, #tpu.memory_space<smem>>, %arg2: memref<16x128xf32, #tpu.memory_space<vmem>>, %arg3: memref<16x128xf32, #tpu.memory_space<vmem>>) attributes {dimension_semantics = [#tpu.dimension_semantics<parallel>], iteration_bounds = array<i64: 2>, scalar_prefetch = 0 : i64, scratch_operands = 0 : i64, tpu.core_type = #tpu.core_type<tc>, window_params = [{transform_indices = @transform_0, window_bounds = array<i64: 1, 2>}, {transform_indices = @transform_1, window_bounds = array<i64: 16, 128>}, {transform_indices = @transform_2, window_bounds = array<i64: 16, 128>}]} {
    %c0 = arith.constant 0 : index
    %c0_0 = arith.constant 0 : index
    %0 = memref.load %arg1[%c0, %c0_0] : memref<1x2xf32, #tpu.memory_space<smem>>
    %c0_1 = arith.constant 0 : index
    %c1 = arith.constant 1 : index
    %1 = memref.load %arg1[%c0_1, %c1] : memref<1x2xf32, #tpu.memory_space<smem>>
    %c0_2 = arith.constant 0 : index
    %c0_3 = arith.constant 0 : index
    %2 = vector.load %arg2[%c0_2, %c0_3] : memref<16x128xf32, #tpu.memory_space<vmem>>, vector<16x128xf32>
    %3 = vector.broadcast %0 : f32 to vector<16x128xf32>
    %4 = arith.mulf %2, %3 : vector<16x128xf32>
    %5 = vector.broadcast %1 : f32 to vector<16x128xf32>
    %6 = arith.addf %4, %5 : vector<16x128xf32>
    %7 = math.exp %6 : vector<16x128xf32>
    %c0_4 = arith.constant 0 : index
    %c0_5 = arith.constant 0 : index
    %8 = vector.load %arg3[%c0_4, %c0_5] : memref<16x128xf32, #tpu.memory_space<vmem>>, vector<16x128xf32>
    tpu.vector_store %arg3[%c0_4, %c0_5], %7 {strides = array<i32>} : memref<16x128xf32, #tpu.memory_space<vmem>>, vector<16x128xf32>,
    return
  }
  func.func @transform_0(%arg0: i32) -> (i32, i32) {
    %c0_i32 = arith.constant 0 : i32
    %c0_i32_0 = arith.constant 0 : i32
    %c0_i32_1 = arith.constant 0 : i32
    return %c0_i32, %c0_i32_0 : i32, i32
  }
  func.func @transform_1(%arg0: i32) -> (i32, i32) {
    %c0_i32 = arith.constant 0 : i32
    %c0_i32_0 = arith.constant 0 : i32
    return %arg0, %c0_i32 : i32, i32
  }
  func.func @transform_2(%arg0: i32) -> (i32, i32) {
    %c0_i32 = arith.constant 0 : i32
    %c0_i32_0 = arith.constant 0 : i32
    return %arg0, %c0_i32 : i32, i32
  }
}

</mosaic_0001>

<bundles_post_ra>
// kernel: _scale_pallas.2
= control target key start
LH: loop header
LB: loop body
LE: loop exit
PB: predicated region body
PF: predicated region fallthrough
CT: control target
= control target key end

     0   :  { %s638_s0 = inlined_call_operand.vmem [shape: f32[1,2], index: 0, kind: input, shape index: {}]   ;;  %s639_s1 = inlined_call_operand.hbm [shape: f32[3000], index: 1, kind: input, shape index: {}]   ;;  %s640_s2 = inlined_call_operand.<no memory space> [shape: f32[], index: 2, kind: input, shape index: {}]   ;;  %s641_s3 = inlined_call_operand.vmem [shape: f32[32,128], index: 3, kind: output, shape index: {}]  }
   0x1   :  { %v500_v0 = vstv %s640_s2 }
   0x2   :  { %9 = vsyncpa [#allocation9], 0 }
   0x3   :  { %10 = vsyncpa [#allocation8], 0 }
   0x4   :  { %12 = vsyncpa [#allocation8 + $0x1], 0  ;;  %s502_s14 = smov 0   ;;  %s504_s15 = smov 0  }
   0x5   :  { %s506_s16 = smov 0   ;;  %s508_s17 = smov 0  }
   0x6 LB: > { %s521_s2 = sadd.s32 4294967295, %s473_s17   ;;  %s524_s18 = sadd.s32 1, %s473_s17   ;;  %s473_s17 = sphi %s508_s17, %s655_s17   ;;  %s469_s16 = sphi %s506_s16, %s654_s16   ;;  %s465_s15 = sphi %s504_s15, %s653_s15   ;;  %s461_s14 = sphi %s502_s14, %s652_s14  }
   0x7   : > { %s43_s19 = ssub.s32 %s473_s17, %s524_s18  ;;  %s46_s20 = sadd.s32 1, %s469_s16 }
   0x8   : > { %p44_p0 = scmp.eq.s32.totalorder %s43_s19, 0  ;;  %p53_p1 = scmp.ne.s32.totalorder %s469_s16, %s465_s15 }
   0x9   : > { %p54_p2 = scmp.eq.s32.totalorder %s473_s17, 0  ;;  %p59_p3 = scmp.ne.s32.totalorder %s465_s15, %s461_s14 }
   0xa   : > { %s534_s21 = scalar_select %p44_p0, %s469_s16, %s46_s20  }
   0xb   : > { %p536_p4 = por %p54_p2, %p53_p1  ;;  %p643_p5 = scmp.eq.s32.totalorder %s521_s2, 0 }
   0xc   : > { %p317_p6 = scmp.ge.s32.totalorder %s473_s17, 1  ;;  %p96_p7 = scmp.lt.s32.totalorder %s473_s17, 3 }
   0xd   : > { %p545_p8 = por %p643_p5, %p59_p3  ;;  %s109_s27 = sshll.u32 %s638_s0, 4  ;;  %s110_s27 = int_to_ptr.vmem [resolvable:$true] %s109_s27 }
   0xe   : > { %p549_p9 = pnand %p317_p6, %p96_p7  ;;  %s392_s28 = scalar_lea.vmem %s110_s27, 16 }
   0xf   : > { %s646_s23 = scalar_select %p545_p8, 1, 0 }
  0x10   : > { %s647_s24 = scalar_select %p549_p9, 1, 0 }
  0x11   : > { %p349_p10 = pneg %p549_p9  ;;  %p393_p12 = scmp.ne.s32.totalorder %s110_s27, %s392_s28 }
  0x12   : > { %p400_p2 = scmp.lt.s32.totalorder %s110_s27, %s110_s27  ;;  %p401_p3 = scmp.lt.s32.totalorder %s392_s28, %s392_s28 }
  0x13   : > { %p350_p11 = pnand %p349_p10, %p643_p5 }
  0x14   : > { %p402_p6 = por %p401_p3, %p400_p2 }
  0x15   : > { %p394_p13 = pneg %p350_p11 }
  0x17   : > { %p395_p0 = pnand %p394_p13, %p393_p12 }
  0x19   : > { %p396_p1 = pneg %p395_p0 }
  0x1b   : > { %p403_p7 = pnand %p402_p6, %p396_p1 }
  0x1d   : > { %406 = shalt.err (!%p403_p7)
}
  0x1e   : > { %s475_s29 = smov [#allocation7]   ;;  %p319_p8 = scmp.ge.s32.totalorder %s473_s17, 2 }
  0x1f   : > { %352 = dma.vmem_to_smem (!%p350_p11), %s110_s27, 16, %s475_s29, [#allocation9]  }
  0x20   : > { %116 = sbr.rel (%p319_p8) target bundleno = 73 (0x49), region = 20 }
  0x27   : > { %119 = sbr.rel (!%p536_p4) target bundleno = 73 (0x49), region = 24  ;;  %s120_s30 = sand.u32 (%p536_p4), 1, %s469_s16  }
  0x28   : > { %s321_s4 = sshll.u32 (%p536_p4), %s473_s17, 1  ;;  %s320_s5 = sshll.u32 (%p536_p4), %s120_s30, 4 }
  0x29   : > { %s126_s6 = ssub.s32 (%p536_p4), 3, %s321_s4  ;;  %s568_s9 = scalar_lea.sflag (%p536_p4), [#allocation8], %s120_s30 }
  0x2a   : > { %p127_p10 = scmp.lt.s32.totalorder (%p536_p4), %s126_s6, 2  ;;  %s124_s10 = scalar_lea.vmem (%p536_p4), [#allocation10], %s320_s5 }
  0x2e   : > { %s657_s6 = smov (!%p127_p10, %s126_s6), 2 }
  0x2f   : > { %s565_s7 = sshll.u32 %s657_s6, 7 }
  0x30   : > { %s131_s8 = ssub.s32 256, %s565_s7 }
  0x31   : > { %132 = vsyncadd %s568_s9, %s131_s8  ;;  %p323_p4 = scmp.ne.s32.totalorder %s565_s7, 0  ;;  %s339_s11 = sshll.u32 %s473_s17, 8 }
  0x32   : > { %s576_s14 = scalar_lea.hbm %s639_s1, %s339_s11  ;;  %s138_s19 = sshll.u32 %s124_s10, 4  ;;  %s139_s19 = int_to_ptr.vmem [resolvable:$true] %s138_s19 }
  0x33   : > { %s407_s20 = scalar_lea.hbm %s576_s14, %s565_s7  ;;  %s411_s17 = scalar_lea.hbm %s639_s1, 384 }
  0x34   : > { %p408_p8 = scmp.ne.s32.totalorder %s576_s14, %s407_s20  ;;  %p412_p13 = scmp.lt.u32.totalorder %s576_s14, %s639_s1 }
  0x35   : > { %p413_p0 = scmp.lt.u32.totalorder %s411_s17, %s407_s20  ;;  %p415_p2 = scmp.lt.u32.totalorder %s407_s20, %s576_s14 }
  0x36   : > { %p409_p11 = pnand %p408_p8, %p323_p4 }
  0x37   : > { %p414_p1 = por %p413_p0, %p412_p13 }
  0x38   : > { %p410_p12 = pneg %p409_p11 }
  0x39   : > { %p416_p3 = por %p415_p2, %p414_p1 }
  0x3b   : > { %p417_p6 = pnand %p416_p3, %p410_p12 }
  0x3d   : > { %420 = shalt.err (!%p417_p6)
}
  0x3e   : > { %s421_s28 = scalar_lea.vmem %s139_s19, %s565_s7  ;;  %s476_s29 = smov [#allocation10]  }
  0x3f   : > { %p422_p7 = scmp.ne.s32.totalorder %s139_s19, %s421_s28  ;;  %s425_s30 = sshll.u32 %s476_s29, 4  ;;  %s426_s30 = int_to_ptr.vmem [resolvable:$false] %s425_s30 }
  0x40   : > { %s427_s4 = scalar_lea.vmem %s426_s30, 512  ;;  %p428_p11 = scmp.lt.s32.totalorder %s139_s19, %s426_s30 }
  0x41   : > { %p423_p10 = pnand %p422_p7, %p323_p4  ;;  %p429_p5 = scmp.lt.s32.totalorder %s427_s4, %s421_s28 }
  0x43   : > { %p424_p8 = pneg %p423_p10  ;;  %p430_p9 = por %p429_p5, %p428_p11 }
  0x45   : > { %p431_p0 = pnand %p430_p9, %p424_p8 }
  0x47   : > { %434 = shalt.err (!%p431_p0)
}
  0x48   : > { %141 = dma.hbm_to_vmem [thread:$0]  (%p323_p4), %s576_s14, %s565_s7, %s139_s19, %s568_s9  }
  0x49 PF: > { %p648_p12 = scmp.ne.s32.totalorder %s647_s24, 0 }
  0x4a   : > { %p649_p13 = scmp.eq.s32.totalorder (!%p648_p12), %s521_s2, 0 }
  0x4b   : > { %147 = sbr.rel (%p648_p12) target bundleno = 118 (0x76), region = 28 }
  0x52   : > { %452 = dma.done.wait (%p649_p13), [#allocation9], 16   ;;  %p650_p1 = pmov %p649_p13 }
  0x53   : > { %s153_s5 = sand.u32 1, %s465_s15   ;;  %p651_p5 = scmp.ne.s32.totalorder %s646_s23, 0 }
  0x54   : > { %454 = vsyncadd (%p650_p1), [#allocation9], 4294967280  ;;  %s329_s6 = sshll.u32 %s153_s5, 4  ;;  %s154_s8 = scalar_lea.sflag [#allocation8], %s153_s5 }
  0x55   : > { %s157_s10 = scalar_lea.vmem [#allocation10], %s329_s6 }
  0x56   : > { %456 = dma.done.wait (%p651_p5), %s154_s8, 256  }
  0x57   : > { %458 = vsyncadd (%p651_p5), %s154_s8, 4294967040 }
  0x58   : > { %162 = sfence }
  0x59   : > { %s611_s24 = sshll.u32 %s521_s2, 1  ;;  %s340_s7 = sshll.u32 %s521_s2, 11  ;;  %v196_v1 = vlaneseq  ;;  %v190_v3 = vld [vmem:[%s157_s10] sm:$0xff]  ;;  %v334_v7 = vld [vmem:[%s157_s10 + $0x8] sm:$0xff] }
  0x5a   : > { %s191_s9 = ssub.s32 2, %s611_s24  ;;  %v197_v2 = vstv %s340_s7  ;;  %s205_s11 = sadd.s32 1, %s611_s24 }
  0x5b   : > { %v192_v4 = vstv %s191_s9  ;;  %v198_v5 = vadd.s32 %v197_v2, %v196_v1  ;;  %s342_s12 = sadd.s32 1024, %s340_s7  ;;  %s206_s23 = ssub.s32 2, %s205_s11 }
  0x5c   : > { %vm193_vm0 = vcmp.lt.s32.totalorder %v192_v4, 0  ;;  %v213_v6 = vstv %s342_s12  ;;  %s220_s13 = sld [smem:[#allocation7]]  ;;  %v207_v10 = vstv %s206_s23  ;;  %s336_s2 = sld [smem:[#allocation7 + $0x1]] }
  0x5d   : > { %v214_v8 = vadd.s32 %v213_v6, %v196_v1  ;;  %v194_v9 = vsel %vm193_vm0, %v500_v0, %v190_v3  ;;  %vm199_vm1 = vcmp.lt.s32.totalorder %v198_v5, 3000  ;;  %vm208_vm2 = vcmp.lt.s32.totalorder %v207_v10, 0  ;;  %p185_p9 = scmp.lt.s32.totalorder %s611_s24, 3 }
  0x5e   : > { %v209_v11 = vsel %vm208_vm2, %v500_v0, %v334_v7  ;;  %v200_v12 = vsel %vm199_vm1, %v194_v9, %v500_v0 }
  0x5f   : > { %vm215_vm3 = vcmp.lt.s32.totalorder %v214_v8, 3000  ;;  %s659_s24 = smov (!%p185_p9, %s611_s24), 3 }
  0x60   : > { %v216_v13 = vsel %vm215_vm3, %v209_v11, %v500_v0  ;;  %s332_s14 = sshll.u32 %s659_s24, 3 }
  0x61   : > { %s188_s22 = scalar_lea.vmem %s641_s3, %s332_s14 }
  0x62   : > { %v224_v14 = vstv %s220_s13  ;;  %v227_v17 = vstv %s336_s2 }
  0x63   : > { %v225_v15 = vmul.f32 %v224_v14, %v200_v12  ;;  %v226_v16 = vmul.f32 %v224_v14, %v216_v13 }
  0x65   : > { %v228_v18 = vadd.f32 %v227_v17, %v225_v15  ;;  %v229_v19 = vadd.f32 %v227_v17, %v226_v16 }
  0x67   : > { %v230_v20 = vmul.f32 1.442695, %v228_v18  ;;  %v232_v21 = vmul.f32 1.442695, %v229_v19 }
  0x69   : > { %388 = vpow2.f32 %v230_v20 }
  0x6a   : > { %390 = vpow2.f32 %v232_v21 }
  0x73   : > { %v389_v22 = vpop.eup %388 }
  0x74   : > { %v391_v23 = vpop.eup %390  ;;  %234 = vst [vmem:[%s188_s22] sm:$0xff] %v389_v22 }
  0x75   : > { %235 = vst [vmem:[%s188_s22 + $0x8] sm:$0xff] %v391_v23 }
  0x76 PF: > { %p15_p4 = scmp.ge.s32.totalorder %s524_s18, 4   ;;  %s652_s14 = smov %s465_s15 }
  0x77   : > { %s653_s15 = smov %s469_s16  ;;  %s654_s16 = smov %s534_s21 }
  0x78   : > { %s655_s17 = smov %s524_s18  ;;  %17 = sbr.rel (!%p15_p4) target bundleno = 6 (0x6), region = 75 }
  0x7f   :  { %258 = vsyncpa [#allocation8], 1 }
  0x80   :  { %260 = vsyncpa [#allocation8 + $0x1], 1 }
  0x81   :  { %261 = vsyncpa [#allocation9], 1 }
  0x82   :  { %263 = vsyncpa [#allocation9 + $0x1], 1 }

</bundles_post_ra>
